<compile_context>
chip_gen: v7x
topology: tpu7x:2x2x1
jax: 0.10.0
libtpu: 0.0.40
codegen_flags: <defaults>
</compile_context>

<pallas_src>
import functools

import jax
import jax.numpy as jnp
from jax.experimental import pallas as pl
from jax.experimental.pallas import tpu as pltpu


def _lsce_kernel(preds_ref, tgt_ref, smooth_ref, nll_ref, *, n_rows, tile_m):
    i = pl.program_id(0)
    c = preds_ref.shape[-1]

    x_in = preds_ref[...]                                     # (TM, C) native
    tgt = tgt_ref[...]                                        # (TM, 1) int32

    # Row max and the one-hot gather are exact in the native dtype; keep them
    # on packed vregs (halves the VALU op count for bf16 on v6e/v7x; neutral
    # on v5e which upcasts anyway).
    m = jnp.max(x_in, axis=-1, keepdims=True).astype(jnp.float32)     # (TM, 1)
    col = jax.lax.broadcasted_iota(jnp.int32, (1, c), 1)               # (1, C)
    onehot = col == tgt                                                # (TM, C)
    x_tgt = jnp.sum(jnp.where(onehot, x_in, 0),
                    axis=-1, keepdims=True).astype(jnp.float32)        # (TM, 1)

    # Numerically stable logsumexp + row sum in f32; logp itself never built.
    # TODO(synk): the two row reductions below could be offloaded to the idle
    # MXU (dot with a ones column) on the bf16 path; kept on VPU/XLU here for
    # lowering robustness.
    x = x_in.astype(jnp.float32)
    lse = m + jnp.log(jnp.sum(jnp.exp(x - m), axis=-1, keepdims=True))  # (TM,1)
    sum_x = jnp.sum(x, axis=-1, keepdims=True)                          # (TM,1)

    # Mask rows past the real batch.  The ragged last tile reads garbage rows;
    # a select (not a multiply) keeps any NaN/Inf there from propagating.
    row_idx = i * tile_m + jax.lax.broadcasted_iota(jnp.int32, (tile_m, 1), 0)
    valid = row_idx < n_rows                                   # (TM, 1) bool
    row_smooth = jnp.where(valid, c * lse - sum_x, 0.0)        # -sum_c logp
    row_nll = jnp.where(valid, lse - x_tgt, 0.0)               # -logp[target]

    # One lane-dense (8,128) splat per tile per output; wrapper reads [0,0].
    smooth_ref[...] = jnp.broadcast_to(jnp.sum(row_smooth), smooth_ref.shape)
    nll_ref[...] = jnp.broadcast_to(jnp.sum(row_nll), nll_ref.shape)


def _vmem_limit_bytes():
    # Generation-aware headroom: 48 MiB on 128 MiB parts (v5e/v6e), 32 MiB on
    # 64 MiB parts (v7x).  Fall back to the conservative (v7x) value.
    cap = None
    try:
        cap = getattr(pltpu.get_tpu_info(), "vmem_capacity_bytes", None)
    except Exception:
        cap = None
    if not cap:
        cap = 64 * 1024 * 1024
    return min(48 * 1024 * 1024, cap // 2)


def _choose_tile_m(n_rows, n_classes, itemsize):
    # Sublane-packing granularity: f32 -> 8, bf16/f16 -> 16, int8/fp8 -> 32.
    base = {4: 8, 2: 16, 1: 32}.get(itemsize, 8)
    n_pad = -(-n_rows // base) * base

    # Honest per-row VMEM model:
    #   preds tile, double-buffered:                  2 * C * itemsize
    #   f32/mask temporaries (cast, x-m, exp, select): ~20 * C
    #   target tile, lane-padded, double-buffered:     2 * 128 * 4
    per_row = 2 * n_classes * itemsize + 20 * n_classes + 2 * 128 * 4
    budget = 20 * 1024 * 1024
    tile = max(base, (budget // per_row) // base * base)

    # A single preds DMA buffer past ~2 MiB buys nothing (DMA roofline).
    dma_rows = max(base,
                   ((2 * 1024 * 1024) // (n_classes * itemsize)) // base * base)
    tile = min(tile, dma_rows)

    # Keep >= 8 grid steps when the batch allows it (megacore + pipelining).
    if n_pad // base >= 8:
        tile = min(tile, max(base, (n_pad // 8) // base * base))

    return min(tile, n_pad)


@functools.partial(jax.jit, static_argnames=("epsilon", "reduction"))
def label_smoothing_cross_entropy(preds, target, *, epsilon=0.1, reduction="mean"):
    """preds: [N, C] float, target: [N] int -> scalar loss (f32)."""
    if reduction not in ("mean", "sum"):
        # TODO(synk): reduction='none' needs a per-row output; not implemented.
        raise NotImplementedError(f"reduction={reduction!r} not supported")

    N, C = preds.shape
    # TODO(synk): for very large vocabularies (C ~ 128K+) add a class-blocked
    # online-logsumexp variant (grid (N/tm, C/tc), class axis last/'arbitrary')
    # so the row tile doesn't collapse to the sublane base on 64 MiB v7x VMEM.
    tile_m = _choose_tile_m(N, C, preds.dtype.itemsize)
    num_tiles = -(-N // tile_m)

    # Only the tiny target array gets reshaped; preds go to the kernel as-is
    # (no HBM round-trip through jnp.pad).
    tgt2d = target.astype(jnp.int32).reshape(N, 1)

    kernel = functools.partial(_lsce_kernel, n_rows=N, tile_m=tile_m)
    out_block = pl.BlockSpec((1, 8, 128), lambda i: (i, 0, 0))

    smooth_p, nll_p = pl.pallas_call(
        kernel,
        out_shape=(jax.ShapeDtypeStruct((num_tiles, 8, 128), jnp.float32),
                   jax.ShapeDtypeStruct((num_tiles, 8, 128), jnp.float32)),
        grid_spec=pltpu.PrefetchScalarGridSpec(
            num_scalar_prefetch=0,
            grid=(num_tiles,),
            in_specs=[
                pl.BlockSpec((tile_m, C), lambda i: (i, 0)),
                pl.BlockSpec((tile_m, 1), lambda i: (i, 0)),
            ],
            out_specs=[out_block, out_block],
        ),
        compiler_params=pltpu.CompilerParams(
            dimension_semantics=("parallel",),
            vmem_limit_bytes=_vmem_limit_bytes(),
        ),
    )(preds, tgt2d)

    smooth_sum = jnp.sum(smooth_p[:, 0, 0])   # sum_i (-sum_c logp_ic)
    nll_sum = jnp.sum(nll_p[:, 0, 0])         # sum_i (-logp_{i,target_i})

    if reduction == "mean":
        loss = smooth_sum / N
        nll = nll_sum / N
    else:  # "sum"
        loss = smooth_sum
        nll = nll_sum
    return epsilon * (loss / C) + (1.0 - epsilon) * nll


def _reference(preds, target, epsilon=0.1, reduction="mean"):
    logp = jax.nn.log_softmax(preds.astype(jnp.float32), axis=-1)
    n = preds.shape[-1]
    per_row_smooth = -jnp.sum(logp, axis=-1)
    per_row_nll = -jnp.take_along_axis(
        logp, target[:, None].astype(jnp.int32), axis=-1)[:, 0]
    if reduction == "mean":
        loss, nll = per_row_smooth.mean(), per_row_nll.mean()
    else:
        loss, nll = per_row_smooth.sum(), per_row_nll.sum()
    return epsilon * (loss / n) + (1.0 - epsilon) * nll


if __name__ == "__main__":
    key = jax.random.PRNGKey(0)
    k1, k2, k3, k4 = jax.random.split(key, 4)

    # Case 1: small f32 shapes (exact tile fit).
    N, C = 8, 32
    preds = jax.random.normal(k1, (N, C), dtype=jnp.float32)
    target = jax.random.randint(k2, (N,), 0, C, dtype=jnp.int32)
    out = jax.block_until_ready(
        label_smoothing_cross_entropy(preds, target, epsilon=0.1))
    ref = _reference(preds, target, epsilon=0.1)
    assert jnp.allclose(out, ref, rtol=1e-4, atol=1e-4), (out, ref)

    # Case 2: bf16 preds with a ragged batch — exercises the in-kernel row
    # masking; no HBM padding of preds happens in the wrapper.
    N2, C2 = 13, 160
    preds2 = jax.random.normal(k3, (N2, C2), dtype=jnp.bfloat16)
    target2 = jax.random.randint(k4, (N2,), 0, C2, dtype=jnp.int32)
    out2 = jax.block_until_ready(
        label_smoothing_cross_entropy(preds2, target2, epsilon=0.1))
    ref2 = _reference(preds2, target2, epsilon=0.1)
    assert jnp.allclose(out2, ref2, rtol=1e-4, atol=1e-4), (out2, ref2)

    print("KERNEL_OK")
</pallas_src>

<mosaic_0001>
module attributes {stable_mosaic.version = 11 : i64} {
  func.func @_lsce_kernel(%arg0: i32, %arg1: memref<8x32xf32, #tpu.memory_space<vmem>>, %arg2: memref<8x1xi32, #tpu.memory_space<vmem>>, %arg3: memref<1x8x128xf32, #tpu.memory_space<vmem>>, %arg4: memref<1x8x128xf32, #tpu.memory_space<vmem>>) attributes {dimension_semantics = [#tpu.dimension_semantics<parallel>], iteration_bounds = array<i64: 1>, scalar_prefetch = 0 : i64, scratch_operands = 0 : i64, tpu.core_type = #tpu.core_type<tc>, window_params = [{transform_indices = @transform_0, window_bounds = array<i64: 8, 32>}, {transform_indices = @transform_1, window_bounds = array<i64: 8, 1>}, {transform_indices = @transform_2, window_bounds = array<i64: 1, 8, 128>}, {transform_indices = @transform_3, window_bounds = array<i64: 1, 8, 128>}]} {
    %c0 = arith.constant 0 : index
    %c0_0 = arith.constant 0 : index
    %0 = vector.load %arg1[%c0, %c0_0] : memref<8x32xf32, #tpu.memory_space<vmem>>, vector<8x32xf32>
    %c0_1 = arith.constant 0 : index
    %c0_2 = arith.constant 0 : index
    %1 = vector.load %arg2[%c0_1, %c0_2] : memref<8x1xi32, #tpu.memory_space<vmem>>, vector<8x1xi32>
    %cst = arith.constant dense<0xFF800000> : vector<8xf32>
    %2 = vector.multi_reduction <maximumf>, %0, %cst [1] : vector<8x32xf32> to vector<8xf32>
    %3 = vector.shape_cast %2 : vector<8xf32> to vector<8x1xf32>
    %4 = tpu.iota {dimensions = array<i32: 1>} : vector<1x32xi32>
    %5 = vector.broadcast %4 : vector<1x32xi32> to vector<8x32xi32>
    %6 = vector.broadcast %1 : vector<8x1xi32> to vector<8x32xi32>
    %7 = arith.cmpi eq, %5, %6 : vector<8x32xi32>
    %c0_i32 = arith.constant 0 : i32
    %8 = arith.sitofp %c0_i32 : i32 to f32
    %9 = vector.broadcast %8 : f32 to vector<8x32xf32>
    %10 = arith.select %7, %0, %9 : vector<8x32xi1>, vector<8x32xf32>
    %cst_3 = arith.constant dense<0.000000e+00> : vector<8xf32>
    %11 = vector.multi_reduction <add>, %10, %cst_3 [1] : vector<8x32xf32> to vector<8xf32>
    %12 = vector.shape_cast %11 : vector<8xf32> to vector<8x1xf32>
    %13 = vector.broadcast %3 : vector<8x1xf32> to vector<8x32xf32>
    %14 = arith.subf %0, %13 : vector<8x32xf32>
    %15 = math.exp %14 : vector<8x32xf32>
    %cst_4 = arith.constant dense<0.000000e+00> : vector<8xf32>
    %16 = vector.multi_reduction <add>, %15, %cst_4 [1] : vector<8x32xf32> to vector<8xf32>
    %17 = vector.shape_cast %16 : vector<8xf32> to vector<8x1xf32>
    %18 = math.log %17 : vector<8x1xf32>
    %19 = arith.addf %3, %18 : vector<8x1xf32>
    %cst_5 = arith.constant dense<0.000000e+00> : vector<8xf32>
    %20 = vector.multi_reduction <add>, %0, %cst_5 [1] : vector<8x32xf32> to vector<8xf32>
    %21 = vector.shape_cast %20 : vector<8xf32> to vector<8x1xf32>
    %c8_i32 = arith.constant 8 : i32
    %22 = arith.muli %arg0, %c8_i32 : i32
    %23 = tpu.iota {dimensions = array<i32: 0>} : vector<8x1xi32>
    %24 = vector.broadcast %22 : i32 to vector<8x1xi32>
    %25 = arith.addi %24, %23 : vector<8x1xi32>
    %c8_i32_6 = arith.constant 8 : i32
    %26 = vector.broadcast %c8_i32_6 : i32 to vector<8x1xi32>
    %27 = arith.cmpi slt, %25, %26 : vector<8x1xi32>
    %cst_7 = arith.constant 3.200000e+01 : f32
    %28 = vector.broadcast %cst_7 : f32 to vector<8x1xf32>
    %29 = arith.mulf %28, %19 : vector<8x1xf32>
    %30 = arith.subf %29, %21 : vector<8x1xf32>
    %cst_8 = arith.constant 0.000000e+00 : f32
    %31 = vector.broadcast %cst_8 : f32 to vector<8x1xf32>
    %32 = arith.select %27, %30, %31 : vector<8x1xi1>, vector<8x1xf32>
    %33 = arith.subf %19, %12 : vector<8x1xf32>
    %cst_9 = arith.constant 0.000000e+00 : f32
    %34 = vector.broadcast %cst_9 : f32 to vector<8x1xf32>
    %35 = arith.select %27, %33, %34 : vector<8x1xi1>, vector<8x1xf32>
    %36 = vector.shape_cast %32 : vector<8x1xf32> to vector<1x8x1xf32>
    %cst_10 = arith.constant dense<0.000000e+00> : vector<1xf32>
    %37 = vector.multi_reduction <add>, %36, %cst_10 [1, 2] : vector<1x8x1xf32> to vector<1xf32>
    %38 = vector.shape_cast %37 : vector<1xf32> to vector<1x1x1xf32>
    %39 = vector.extract %38[0, 0, 0] : f32 from vector<1x1x1xf32>
    %40 = vector.broadcast %39 : f32 to vector<1x8x128xf32>
    %c0_11 = arith.constant 0 : index
    %c0_12 = arith.constant 0 : index
    %c0_13 = arith.constant 0 : index
    %41 = vector.load %arg3[%c0_11, %c0_12, %c0_13] : memref<1x8x128xf32, #tpu.memory_space<vmem>>, vector<1x8x128xf32>
    tpu.vector_store %arg3[%c0_11, %c0_12, %c0_13], %40 {strides = array<i32>} : memref<1x8x128xf32, #tpu.memory_space<vmem>>, vector<1x8x128xf32>,
    %42 = vector.shape_cast %35 : vector<8x1xf32> to vector<1x8x1xf32>
    %cst_14 = arith.constant dense<0.000000e+00> : vector<1xf32>
    %43 = vector.multi_reduction <add>, %42, %cst_14 [1, 2] : vector<1x8x1xf32> to vector<1xf32>
    %44 = vector.shape_cast %43 : vector<1xf32> to vector<1x1x1xf32>
    %45 = vector.extract %44[0, 0, 0] : f32 from vector<1x1x1xf32>
    %46 = vector.broadcast %45 : f32 to vector<1x8x128xf32>
    %c0_15 = arith.constant 0 : index
    %c0_16 = arith.constant 0 : index
    %c0_17 = arith.constant 0 : index
    %47 = vector.load %arg4[%c0_15, %c0_16, %c0_17] : memref<1x8x128xf32, #tpu.memory_space<vmem>>, vector<1x8x128xf32>
    tpu.vector_store %arg4[%c0_15, %c0_16, %c0_17], %46 {strides = array<i32>} : memref<1x8x128xf32, #tpu.memory_space<vmem>>, vector<1x8x128xf32>,
    return
  }
  func.func @transform_0(%arg0: i32) -> (i32, i32) {
    %c0_i32 = arith.constant 0 : i32
    %c0_i32_0 = arith.constant 0 : i32
    return %arg0, %c0_i32 : i32, i32
  }
  func.func @transform_1(%arg0: i32) -> (i32, i32) {
    %c0_i32 = arith.constant 0 : i32
    %c0_i32_0 = arith.constant 0 : i32
    return %arg0, %c0_i32 : i32, i32
  }
  func.func @transform_2(%arg0: i32) -> (i32, i32, i32) {
    %c0_i32 = arith.constant 0 : i32
    %c0_i32_0 = arith.constant 0 : i32
    %c0_i32_1 = arith.constant 0 : i32
    return %arg0, %c0_i32, %c0_i32_0 : i32, i32, i32
  }
  func.func @transform_3(%arg0: i32) -> (i32, i32, i32) {
    %c0_i32 = arith.constant 0 : i32
    %c0_i32_0 = arith.constant 0 : i32
    %c0_i32_1 = arith.constant 0 : i32
    return %arg0, %c0_i32, %c0_i32_0 : i32, i32, i32
  }
}

</mosaic_0001>

<bundles_post_ra>
// kernel: label_smoothing_cross_entropy.1
= control target key start
LH: loop header
LB: loop body
LE: loop exit
PB: predicated region body
PF: predicated region fallthrough
CT: control target
= control target key end

     0   :  { %vm15_vm0 = vcmask 261120   ;;  %v95_v1 = vmov 0   ;;  %v19_v7 = vlaneseq  ;;  %vm52_vm2 = vcmask 7168   ;;  %s132_s0 = inlined_call_operand.vmem [shape: f32[8,32], index: 0, kind: input, shape index: {}]   ;;  %s133_s1 = inlined_call_operand.vmem [shape: s32[8,1], index: 1, kind: input, shape index: {}]   ;;  %s134_s2 = inlined_call_operand.vmem [shape: f32[1,8,128], index: 2, kind: output, shape index: {0}]   ;;  %s135_s3 = inlined_call_operand.vmem [shape: f32[1,8,128], index: 3, kind: output, shape index: {1}]  }
   0x1   :  { %v13_v0 = vld [vmem:[%s132_s0] sm:$0xff]  ;;  %90 = vset.pattern.permute.xlu0 %v95_v1 }
   0x2   :  { %v16_v2 = vsel %vm15_vm0, %v13_v0, -inf  ;;  %v14_v3 = vld [vmem:[%s133_s1] sm:$0xff]  ;;  %v20_v8 = vand.u32 127, %v19_v7  ;;  %v38_v14 = vsel %vm15_vm0, %v13_v0, 0.0 }
   0x3   :  { %17 = vmax.xlane.f32.xlu0 %v16_v2 }
  0x19   :  { %22 = vperm.xlu0 %90, %v14_v3  }
  0x90   :  { %v18_v4 = vpop.xlane.xlu0 %17 }
  0x91   :  { %v29_v5 = vsub.f32 %v13_v0, %v18_v4 }
  0x93   :  { %v30_v6 = vmul.f32 1.442695, %v29_v5 }
  0x95   :  { %91 = vpow2.f32 %v30_v6 }
  0x98   :  { %v23_v9 = vpop.permute.xlu0 %22 }
  0x99   :  { %vm24_vm1 = vcmp.eq.s32.totalorder %v20_v8, %v23_v9 }
  0x9a   :  { %v25_v11 = vsel %vm24_vm1, %v13_v0, 0.0 }
  0x9b   :  { %v26_v13 = vsel %vm15_vm0, %v25_v11, 0.0 }
  0x9f   :  { %v92_v10 = vpop.eup %91 }
  0xa0   :  { %v32_v12 = vsel %vm15_vm0, %v92_v10, 0.0 }
  0xa1   :  { %33 = vadd.xlane.f32.xlu1 %v32_v12 }
  0xa5   :  { %27 = vadd.xlane.f32.xlu1 %v26_v13 }
  0xa9   :  { %39 = vadd.xlane.f32.xlu1 %v38_v14 }
 0x12e   :  { %v34_v15 = vpop.xlane.xlu1 %33 }
 0x12f   :  { %93 = vlog2.f32 %v34_v15 }
 0x132   :  { %v28_v16 = vpop.xlane.xlu1 %27 }
 0x136   :  { %v40_v20 = vpop.xlane.xlu1 %39 }
 0x139   :  { %v94_v17 = vpop.eup %93 }
 0x13a   :  { %v36_v18 = vmul.f32 0.6931472, %v94_v17 }
 0x13c   :  { %v37_v19 = vadd.f32 %v36_v18, %v18_v4 }
 0x13e   :  { %v47_v21 = vmul.f32 32.0, %v37_v19  ;;  %v50_v23 = vsub.f32 %v37_v19, %v28_v16 }
 0x140   :  { %v48_v22 = vsub.f32 %v47_v21, %v40_v20  ;;  %v65_v25 = vsel %vm52_vm2, %v50_v23, 0.0 }
 0x142   :  { %v53_v24 = vsel %vm52_vm2, %v48_v22, 0.0 }
 0x143   :  { %54 = vadd.xlane.f32.xlu1 %v53_v24 }
 0x147   :  { %66 = vadd.xlane.f32.xlu1 %v65_v25 }
 0x1d0   :  { %v55_v26 = vpop.xlane.xlu1 %54 }
 0x1d1   :  { %v56_v27 = vrot.slane %v55_v26, 4 }
 0x1d3   :  { %v57_v28 = vadd.f32 %v56_v27, %v55_v26 }
 0x1d4   :  { %v67_v29 = vpop.xlane.xlu1 %66 }
 0x1d5   :  { %v58_v30 = vrot.slane %v57_v28, 2  ;;  %v68_v31 = vrot.slane %v67_v29, 4 }
 0x1d7   :  { %v69_v32 = vadd.f32 %v68_v31, %v67_v29  ;;  %v59_v33 = vadd.f32 %v58_v30, %v57_v28 }
 0x1d9   :  { %v70_v34 = vrot.slane %v69_v32, 2  ;;  %v60_v35 = vrot.slane %v59_v33, 1 }
 0x1db   :  { %v71_v36 = vadd.f32 %v70_v34, %v69_v32  ;;  %v61_v37 = vadd.f32 %v60_v35, %v59_v33 }
 0x1dd   :  { %85 = vpush %v61_v37  ;;  %v72_v38 = vrot.slane %v71_v36, 1 }
 0x1df   :  { %v73_v39 = vadd.f32 %v72_v38, %v71_v36 }
 0x1e1   :  { %87 = vpush %v73_v39 }
 0x20e   :  { %s86_s0 = spop %85 }
 0x20f   :  { %v63_v40 = vstv %s86_s0 }
 0x210   :  { %64 = vst [vmem:[%s134_s2] sm:$0xff] %v63_v40 }
 0x212   :  { %s88_s17 = spop %87 }
 0x213   :  { %v75_v41 = vstv %s88_s17 }
 0x214   :  { %76 = vst [vmem:[%s135_s3] sm:$0xff] %v75_v41 }

</bundles_post_ra>
